<compile_context>
chip_gen: v6e
topology: v6e:2x2x1
jax: 0.10.0
libtpu: 0.0.40
codegen_flags: <defaults>
</compile_context>

<pallas_src>
import functools

import jax
import jax.numpy as jnp
from jax.experimental import pallas as pl
from jax.experimental.pallas import tpu as pltpu

N_TRACK = 10
N_WAYPOINTS = 3
HIDDEN = 32
INPUT_DIM = 5 * N_TRACK * 2        # 100
OUTPUT_DIM = N_WAYPOINTS * 2       # 6
IN_PAD = 128                       # lane-dense padded feature dim (100 -> 128)
OUT_PAD = 8                        # output padded 6 -> 8 only (16x fewer HBM bytes vs 128)
MAX_TILE_B = 8192                  # ~4.5 MiB double-buffered (bf16 x-tile + f32 out-tile)
MIN_TILE_B = 512
SMALL_B_THRESHOLD = 512            # below this, plain XLA beats kernel-launch overhead


def _round_up(x, m):
    return ((x + m - 1) // m) * m


def _choose_tile_b(b_pad8):
    # Aim for ~8 grid steps (>=4 per v7x TensorCore), clamped to [512, 8192],
    # and never larger than the 8-padded batch itself.
    target = _round_up(max(b_pad8 // 8, 1), 8)
    return min(b_pad8, max(MIN_TILE_B, min(target, MAX_TILE_B)))


# ----------------------------- Pallas kernel --------------------------------
def _mlp_kernel(x_ref, w1_ref, b1_ref, w2_ref, b2_ref, w3_ref, b3_ref, o_ref):
    # x tile: (TILE_B, 128) bf16; weights bf16; biases f32; output (TILE_B, 8) f32.
    x = x_ref[...]                                                       # bf16
    h1 = jnp.dot(x, w1_ref[...], preferred_element_type=jnp.float32)    # (T, 32) f32
    h1 = jnp.maximum(h1 + b1_ref[...], 0.0)                             # ReLU in f32
    h2 = jnp.dot(h1.astype(jnp.bfloat16), w2_ref[...],
                 preferred_element_type=jnp.float32)                    # (T, 32) f32
    h2 = jnp.maximum(h2 + b2_ref[...], 0.0)
    out = jnp.dot(h2.astype(jnp.bfloat16), w3_ref[...],
                  preferred_element_type=jnp.float32)                   # (T, 8) f32
    o_ref[...] = (out + b3_ref[...]).astype(o_ref.dtype)                # narrow f32 store


def mlp_forward_pallas(x_pad, padded_params, tile_b):
    """x_pad: (B8, IN_PAD) bf16 -> (B8, OUT_PAD) f32. B8 % 8 == 0; ragged last tile OK."""
    w1, b1, w2, b2, w3, b3 = padded_params
    b8 = x_pad.shape[0]
    grid = (pl.cdiv(b8, tile_b),)

    flops = 2 * b8 * (IN_PAD * HIDDEN + HIDDEN * HIDDEN + HIDDEN * OUT_PAD)
    bytes_accessed = (
        x_pad.size * 2                                   # bf16 activations in
        + b8 * OUT_PAD * 4                               # f32 out (narrow, not 128-wide)
        + (w1.size + w2.size + w3.size) * 2              # bf16 weights
        + (b1.size + b2.size + b3.size) * 4              # f32 biases
    )

    resident = lambda i: (0, 0)  # weights/biases: same block every step -> stay in VMEM
    # TODO(synk): if DMA is still exposed on v7x, add pipeline_mode=pl.Buffered(3)
    # on the x-tile spec; VMEM headroom is ample even at tile 8192.
    return pl.pallas_call(
        _mlp_kernel,
        out_shape=jax.ShapeDtypeStruct((b8, OUT_PAD), jnp.float32),
        grid=grid,
        in_specs=[
            pl.BlockSpec((tile_b, IN_PAD), lambda i: (i, 0)),   # x tile (pipelined)
            pl.BlockSpec((IN_PAD, HIDDEN), resident),           # w1
            pl.BlockSpec((1, HIDDEN), resident),                # b1
            pl.BlockSpec((HIDDEN, HIDDEN), resident),           # w2
            pl.BlockSpec((1, HIDDEN), resident),                # b2
            pl.BlockSpec((HIDDEN, OUT_PAD), resident),          # w3
            pl.BlockSpec((1, OUT_PAD), resident),               # b3
        ],
        out_specs=pl.BlockSpec((tile_b, OUT_PAD), lambda i: (i, 0)),
        compiler_params=pltpu.CompilerParams(
            dimension_semantics=("parallel",),        # shard batch grid across v7x's 2 TCs
            vmem_limit_bytes=32 * 1024 * 1024,        # explicit: v5e scoped default is 16 MiB
        ),
        cost_estimate=pl.CostEstimate(
            flops=flops, transcendentals=0, bytes_accessed=bytes_accessed),
    )(x_pad, w1, b1, w2, b2, w3, b3)


# -------------------------- feature construction ----------------------------
def build_features(track_left, track_right):
    """Mirror of the PyTorch feature engineering. Shapes: (B, n_track, 2) -> (B, 100)."""
    # TODO(synk): for very large B, fuse this assembly into the Pallas kernel
    # (passing track points + precomputed angles/widths) to avoid materializing x
    # in HBM; kept in plain JAX here since it fuses under the jit wrapper.
    centerline = (track_left + track_right) / 2.0                          # (B,10,2)
    diff = track_left - track_right
    lane_width = jnp.sqrt(jnp.sum(diff * diff, axis=2, keepdims=True))     # (B,10,1)
    angles = jnp.arctan2(track_right[..., 1] - track_left[..., 1],
                         track_right[..., 0] - track_left[..., 0])         # (B,10)
    lane_width = jnp.tile(lane_width, (1, 1, 2))                           # (B,10,2)
    angles = jnp.tile(angles[..., None], (1, 1, 2))                        # (B,10,2)
    x = jnp.concatenate(
        [track_left, track_right, centerline, lane_width, angles], axis=1  # (B,50,2)
    ).reshape(track_left.shape[0], -1)                                     # (B,100)
    return x


def _mlp_xla(x, padded_params):
    """Small-B fast path: identical math in plain XLA (no kernel-launch overhead)."""
    w1, b1, w2, b2, w3, b3 = padded_params
    xb = jnp.pad(x, ((0, 0), (0, IN_PAD - INPUT_DIM))).astype(jnp.bfloat16)
    h1 = jnp.maximum(jnp.dot(xb, w1, preferred_element_type=jnp.float32) + b1, 0.0)
    h2 = jnp.maximum(
        jnp.dot(h1.astype(jnp.bfloat16), w2, preferred_element_type=jnp.float32) + b2, 0.0)
    return jnp.dot(h2.astype(jnp.bfloat16), w3, preferred_element_type=jnp.float32) + b3


@functools.partial(jax.jit, static_argnames=("force_pallas",))
def mlp_planner_forward(track_left, track_right, padded_params, force_pallas=False):
    B = track_left.shape[0]
    x = build_features(track_left, track_right)                           # (B, 100) f32

    if force_pallas or B >= SMALL_B_THRESHOLD:
        b8 = _round_up(max(B, 1), 8)               # pad batch to a multiple of 8 only
        tile_b = _choose_tile_b(b8)
        x_pad = jnp.pad(
            x, ((0, b8 - B), (0, IN_PAD - INPUT_DIM))).astype(jnp.bfloat16)
        out = mlp_forward_pallas(x_pad, padded_params, tile_b)            # (b8, 8) f32
    else:
        out = _mlp_xla(x, padded_params)                                  # (B, 8) f32

    return out[:B, :OUTPUT_DIM].reshape(B, N_WAYPOINTS, 2)


# ------------------------------ param init ----------------------------------
def init_params(key):
    """Init matching nn.Linear default (uniform +/- 1/sqrt(fan_in)).
    Weights stored transposed relative to torch: (in, out). Unpadded, f32."""
    dims = [(INPUT_DIM, HIDDEN), (HIDDEN, HIDDEN), (HIDDEN, OUTPUT_DIM)]
    params = []
    for fan_in, fan_out in dims:
        key, kw, kb = jax.random.split(key, 3)
        bound = 1.0 / jnp.sqrt(fan_in)
        w = jax.random.uniform(kw, (fan_in, fan_out), jnp.float32, -bound, bound)
        b = jax.random.uniform(kb, (1, fan_out), jnp.float32, -bound, bound)
        params += [w, b]
    return tuple(params)


def pad_params_for_kernel(params):
    """Zero-pad w1 rows 100->128 and w3/b3 cols 6->8; weights bf16, biases f32."""
    w1, b1, w2, b2, w3, b3 = params
    w1p = jnp.pad(w1, ((0, IN_PAD - INPUT_DIM), (0, 0)))            # (128, 32)
    w3p = jnp.pad(w3, ((0, 0), (0, OUT_PAD - OUTPUT_DIM)))          # (32, 8)
    b3p = jnp.pad(b3, ((0, 0), (0, OUT_PAD - OUTPUT_DIM)))          # (1, 8)
    return (w1p.astype(jnp.bfloat16), b1,
            w2.astype(jnp.bfloat16), b2,
            w3p.astype(jnp.bfloat16), b3p)


# ----------------------------- pure-JAX reference ----------------------------
def mlp_planner_ref(track_left, track_right, params):
    w1, b1, w2, b2, w3, b3 = params
    x = build_features(track_left, track_right)
    h1 = jnp.maximum(x @ w1 + b1, 0.0)
    h2 = jnp.maximum(h1 @ w2 + b2, 0.0)
    out = h2 @ w3 + b3
    return out.reshape(track_left.shape[0], N_WAYPOINTS, 2)


if __name__ == "__main__":
    key = jax.random.PRNGKey(0)
    k_params, k_left, k_right, k_left2, k_right2 = jax.random.split(key, 5)

    params = init_params(k_params)
    padded_params = pad_params_for_kernel(params)

    # Small demo batch, forced through the Pallas kernel.
    B = 4
    track_left = jax.random.normal(k_left, (B, N_TRACK, 2), jnp.float32)
    track_right = jax.random.normal(k_right, (B, N_TRACK, 2), jnp.float32)

    out = mlp_planner_forward(track_left, track_right, padded_params, force_pallas=True)
    out = jax.block_until_ready(out)
    ref = mlp_planner_ref(track_left, track_right, params)
    assert out.shape == (B, N_WAYPOINTS, 2), out.shape
    # bf16 inputs/weights with f32 accumulation -> small relative error vs f32 ref.
    assert jnp.allclose(out, ref, rtol=2e-2, atol=2e-2), (out, ref)

    # Larger batch exercises the auto-dispatch Pallas path with a ragged last tile.
    B2 = 523
    tl2 = jax.random.normal(k_left2, (B2, N_TRACK, 2), jnp.float32)
    tr2 = jax.random.normal(k_right2, (B2, N_TRACK, 2), jnp.float32)
    out2 = jax.block_until_ready(mlp_planner_forward(tl2, tr2, padded_params))
    ref2 = mlp_planner_ref(tl2, tr2, params)
    assert out2.shape == (B2, N_WAYPOINTS, 2), out2.shape
    assert jnp.allclose(out2, ref2, rtol=2e-2, atol=2e-2)

    print("KERNEL_OK")
</pallas_src>

<mosaic_0001>
module attributes {stable_mosaic.version = 11 : i64} {
  func.func @_mlp_kernel(%arg0: i32, %arg1: memref<8x128xbf16, #tpu.memory_space<vmem>>, %arg2: memref<128x32xbf16, #tpu.memory_space<vmem>>, %arg3: memref<1x32xf32, #tpu.memory_space<vmem>>, %arg4: memref<32x32xbf16, #tpu.memory_space<vmem>>, %arg5: memref<1x32xf32, #tpu.memory_space<vmem>>, %arg6: memref<32x8xbf16, #tpu.memory_space<vmem>>, %arg7: memref<1x8xf32, #tpu.memory_space<vmem>>, %arg8: memref<8x8xf32, #tpu.memory_space<vmem>>) attributes {dimension_semantics = [#tpu.dimension_semantics<parallel>], iteration_bounds = array<i64: 1>, scalar_prefetch = 0 : i64, scratch_operands = 0 : i64, tpu.core_type = #tpu.core_type<tc>, window_params = [{transform_indices = @transform_0, window_bounds = array<i64: 8, 128>}, {pipeline_mode = #tpu.pipeline_mode<synchronous>, transform_indices = @transform_1, window_bounds = array<i64: 128, 32>}, {pipeline_mode = #tpu.pipeline_mode<synchronous>, transform_indices = @transform_2, window_bounds = array<i64: 1, 32>}, {pipeline_mode = #tpu.pipeline_mode<synchronous>, transform_indices = @transform_3, window_bounds = array<i64: 32, 32>}, {pipeline_mode = #tpu.pipeline_mode<synchronous>, transform_indices = @transform_4, window_bounds = array<i64: 1, 32>}, {pipeline_mode = #tpu.pipeline_mode<synchronous>, transform_indices = @transform_5, window_bounds = array<i64: 32, 8>}, {pipeline_mode = #tpu.pipeline_mode<synchronous>, transform_indices = @transform_6, window_bounds = array<i64: 1, 8>}, {transform_indices = @transform_7, window_bounds = array<i64: 8, 8>}]} {
    %c0 = arith.constant 0 : index
    %c0_0 = arith.constant 0 : index
    %0 = vector.load %arg1[%c0, %c0_0] : memref<8x128xbf16, #tpu.memory_space<vmem>>, vector<8x128xbf16>
    %c0_1 = arith.constant 0 : index
    %c0_2 = arith.constant 0 : index
    %1 = vector.load %arg2[%c0_1, %c0_2] : memref<128x32xbf16, #tpu.memory_space<vmem>>, vector<128x32xbf16>
    %cst = arith.constant dense<0.000000e+00> : vector<8x32xf32>
    %2 = tpu.matmul %0, %1, %cst {dimension_numbers = #tpu.dot_dimension_numbers<[1], [0], [0], [1], [0, 0, 1, 1], [], []>} : vector<8x128xbf16>, vector<128x32xbf16>, vector<8x32xf32> -> vector<8x32xf32>
    %c0_3 = arith.constant 0 : index
    %c0_4 = arith.constant 0 : index
    %3 = vector.load %arg3[%c0_3, %c0_4] : memref<1x32xf32, #tpu.memory_space<vmem>>, vector<1x32xf32>
    %4 = vector.broadcast %3 : vector<1x32xf32> to vector<8x32xf32>
    %5 = arith.addf %2, %4 : vector<8x32xf32>
    %cst_5 = arith.constant 0.000000e+00 : f32
    %6 = vector.broadcast %cst_5 : f32 to vector<8x32xf32>
    %7 = arith.maximumf %5, %6 : vector<8x32xf32>
    %8 = arith.truncf %7 : vector<8x32xf32> to vector<8x32xbf16>
    %c0_6 = arith.constant 0 : index
    %c0_7 = arith.constant 0 : index
    %9 = vector.load %arg4[%c0_6, %c0_7] : memref<32x32xbf16, #tpu.memory_space<vmem>>, vector<32x32xbf16>
    %cst_8 = arith.constant dense<0.000000e+00> : vector<8x32xf32>
    %10 = tpu.matmul %8, %9, %cst_8 {dimension_numbers = #tpu.dot_dimension_numbers<[1], [0], [0], [1], [0, 0, 1, 1], [], []>} : vector<8x32xbf16>, vector<32x32xbf16>, vector<8x32xf32> -> vector<8x32xf32>
    %c0_9 = arith.constant 0 : index
    %c0_10 = arith.constant 0 : index
    %11 = vector.load %arg5[%c0_9, %c0_10] : memref<1x32xf32, #tpu.memory_space<vmem>>, vector<1x32xf32>
    %12 = vector.broadcast %11 : vector<1x32xf32> to vector<8x32xf32>
    %13 = arith.addf %10, %12 : vector<8x32xf32>
    %cst_11 = arith.constant 0.000000e+00 : f32
    %14 = vector.broadcast %cst_11 : f32 to vector<8x32xf32>
    %15 = arith.maximumf %13, %14 : vector<8x32xf32>
    %16 = arith.truncf %15 : vector<8x32xf32> to vector<8x32xbf16>
    %c0_12 = arith.constant 0 : index
    %c0_13 = arith.constant 0 : index
    %17 = vector.load %arg6[%c0_12, %c0_13] : memref<32x8xbf16, #tpu.memory_space<vmem>>, vector<32x8xbf16>
    %cst_14 = arith.constant dense<0.000000e+00> : vector<8x8xf32>
    %18 = tpu.matmul %16, %17, %cst_14 {dimension_numbers = #tpu.dot_dimension_numbers<[1], [0], [0], [1], [0, 0, 1, 1], [], []>} : vector<8x32xbf16>, vector<32x8xbf16>, vector<8x8xf32> -> vector<8x8xf32>
    %c0_15 = arith.constant 0 : index
    %c0_16 = arith.constant 0 : index
    %19 = vector.load %arg7[%c0_15, %c0_16] : memref<1x8xf32, #tpu.memory_space<vmem>>, vector<1x8xf32>
    %20 = vector.broadcast %19 : vector<1x8xf32> to vector<8x8xf32>
    %21 = arith.addf %18, %20 : vector<8x8xf32>
    %c0_17 = arith.constant 0 : index
    %c0_18 = arith.constant 0 : index
    %22 = vector.load %arg8[%c0_17, %c0_18] : memref<8x8xf32, #tpu.memory_space<vmem>>, vector<8x8xf32>
    tpu.vector_store %arg8[%c0_17, %c0_18], %21 {strides = array<i32>} : memref<8x8xf32, #tpu.memory_space<vmem>>, vector<8x8xf32>,
    return
  }
  func.func @transform_0(%arg0: i32) -> (i32, i32) {
    %c0_i32 = arith.constant 0 : i32
    %c0_i32_0 = arith.constant 0 : i32
    return %arg0, %c0_i32 : i32, i32
  }
  func.func @transform_1(%arg0: i32) -> (i32, i32) {
    %c0_i32 = arith.constant 0 : i32
    %c0_i32_0 = arith.constant 0 : i32
    %c0_i32_1 = arith.constant 0 : i32
    return %c0_i32, %c0_i32_0 : i32, i32
  }
  func.func @transform_2(%arg0: i32) -> (i32, i32) {
    %c0_i32 = arith.constant 0 : i32
    %c0_i32_0 = arith.constant 0 : i32
    %c0_i32_1 = arith.constant 0 : i32
    return %c0_i32, %c0_i32_0 : i32, i32
  }
  func.func @transform_3(%arg0: i32) -> (i32, i32) {
    %c0_i32 = arith.constant 0 : i32
    %c0_i32_0 = arith.constant 0 : i32
    %c0_i32_1 = arith.constant 0 : i32
    return %c0_i32, %c0_i32_0 : i32, i32
  }
  func.func @transform_4(%arg0: i32) -> (i32, i32) {
    %c0_i32 = arith.constant 0 : i32
    %c0_i32_0 = arith.constant 0 : i32
    %c0_i32_1 = arith.constant 0 : i32
    return %c0_i32, %c0_i32_0 : i32, i32
  }
  func.func @transform_5(%arg0: i32) -> (i32, i32) {
    %c0_i32 = arith.constant 0 : i32
    %c0_i32_0 = arith.constant 0 : i32
    %c0_i32_1 = arith.constant 0 : i32
    return %c0_i32, %c0_i32_0 : i32, i32
  }
  func.func @transform_6(%arg0: i32) -> (i32, i32) {
    %c0_i32 = arith.constant 0 : i32
    %c0_i32_0 = arith.constant 0 : i32
    %c0_i32_1 = arith.constant 0 : i32
    return %c0_i32, %c0_i32_0 : i32, i32
  }
  func.func @transform_7(%arg0: i32) -> (i32, i32) {
    %c0_i32 = arith.constant 0 : i32
    %c0_i32_0 = arith.constant 0 : i32
    return %arg0, %c0_i32 : i32, i32
  }
}

</mosaic_0001>

<bundles_post_ra>
// kernel: mlp_planner_forward.1
= control target key start
LH: loop header
LB: loop body
LE: loop exit
PB: predicated region body
PF: predicated region fallthrough
CT: control target
= control target key end

     0   :  { %v364_v0 = vmov 0.0   ;;  %vm365_vm0 = vmmov 0   ;;  %vm164_vm1 = vcmask 261120   ;;  %vm276_vm2 = vcmask 64512   ;;  %s462_s1 = inlined_call_operand.vmem [shape: bf16[128,32], index: 1, kind: input, shape index: {}]   ;;  %s463_s0 = inlined_call_operand.vmem [shape: bf16[8,128], index: 0, kind: input, shape index: {}]   ;;  %s464_s3 = inlined_call_operand.vmem [shape: bf16[32,32], index: 3, kind: input, shape index: {}]   ;;  %s465_s5 = inlined_call_operand.vmem [shape: bf16[32,8], index: 5, kind: input, shape index: {}]   ;;  %s466_s2 = inlined_call_operand.vmem [shape: f32[1,32], index: 2, kind: input, shape index: {}]   ;;  %s467_s4 = inlined_call_operand.vmem [shape: f32[1,32], index: 4, kind: input, shape index: {}]   ;;  %s468_s6 = inlined_call_operand.vmem [shape: f32[1,8], index: 6, kind: input, shape index: {}]   ;;  %s469_s7 = inlined_call_operand.vmem [shape: f32[8,8], index: 7, kind: output, shape index: {}]  }
   0x1   :  { %314 = vmatprep.subr.bf16.mxu0 %v364_v0  ;;  %v352_v1 = vld [vmem:[%s462_s1 + $0x38] sm:$0xff]   ;;  %330 = vmatprep.mubr.msk.bf16.mxu0 %vm365_vm0, %v364_v0  ;;  %v353_v2 = vld [vmem:[%s462_s1 + $0x30] sm:$0xff]   ;;  %v354_v3 = vld [vmem:[%s462_s1 + $0x28] sm:$0xff]  }
   0x2   :  { %334 = vmatprep.subr.bf16.mxu1 %v364_v0  ;;  %338 = vmatprep.mubr.msk.bf16.mxu1 %vm365_vm0, %v364_v0  ;;  %v355_v4 = vld [vmem:[%s462_s1 + $0x20] sm:$0xff]   ;;  %v356_v5 = vld [vmem:[%s462_s1 + $0x18] sm:$0xff]   ;;  %v357_v6 = vld [vmem:[%s462_s1 + $0x10] sm:$0xff]  }
   0x3   :  { %315 = vmatpush3.bf16.msra.mxu0 %v352_v1  ;;  %v358_v7 = vld [vmem:[%s462_s1 + $0x8] sm:$0xff]   ;;  %v359_v8 = vld [vmem:[%s462_s1] sm:$0xff]  }
   0x4   :  { %316 = vmatprep.subr.bf16.mxu0 %v364_v0  ;;  %v27_v9 = vld [vmem:[%s463_s0] sm:$0xf]  ;;  %v360_v10 = vld [vmem:[%s464_s3 + $0x8] sm:$0xff]  }
   0x5   :  { %335 = vmatpush3.bf16.msra.mxu1 %v360_v10  ;;  %v361_v11 = vld [vmem:[%s464_s3] sm:$0xff]   ;;  %v362_v18 = vld [vmem:[%s465_s5 + $0x8] sm:$0xff]  }
   0x6   :  { %336 = vmatprep.subr.bf16.mxu1 %v364_v0  ;;  %v282_v12 = vld [vmem:[%s466_s2] ss:$0 sm:$0xff] }
   0x7   :  { %317 = vmatpush3.bf16.msra.mxu0 %v353_v2  ;;  %v363_v21 = vld [vmem:[%s465_s5] sm:$0xff]  }
   0x8   :  { %318 = vmatprep.subr.bf16.mxu0 %v364_v0  ;;  %v291_v22 = vld [vmem:[%s467_s4] ss:$0 sm:$0xff] }
   0x9   :  { %337 = vmatpush3.bf16.msra.mxu1 %v361_v11  ;;  %v295_v30 = vld [vmem:[%s468_s6] ss:$0 sm:$0xff] }
   0xa   :  { %342 = vmatprep.subr.bf16.mxu1 %v364_v0 }
   0xb   :  { %319 = vmatpush3.bf16.msra.mxu0 %v354_v3 }
   0xc   :  { %320 = vmatprep.subr.bf16.mxu0 %v364_v0 }
   0xf   :  { %321 = vmatpush3.bf16.msra.mxu0 %v355_v4 }
  0x10   :  { %322 = vmatprep.subr.bf16.mxu0 %v364_v0 }
  0x13   :  { %323 = vmatpush3.bf16.msra.mxu0 %v356_v5 }
  0x14   :  { %324 = vmatprep.subr.bf16.mxu0 %v364_v0 }
  0x17   :  { %325 = vmatpush3.bf16.msra.mxu0 %v357_v6 }
  0x18   :  { %326 = vmatprep.subr.bf16.mxu0 %v364_v0 }
  0x1b   :  { %327 = vmatpush3.bf16.msra.mxu0 %v358_v7 }
  0x1c   :  { %328 = vmatprep.subr.bf16.mxu0 %v364_v0 }
  0x1f   :  { %329 = vmatpush3.bf16.msra.mxu0 %v359_v8 }
  0x22   :  { %331 = vmatmul.mubr.bf16.vlgmr.msra.gmra.mxu0 %v27_v9 }
  0xe2   :  { %v133_v13 = vpop.f32.mrf.mxu0 }
  0xe3   :  { %v134_v14 = vadd.f32 %v282_v12, %v133_v13 }
  0xe4   :  { %v332_v15 = vpop.f32.mrf.mxu0 }
  0xe5   :  { %v139_v16 = vmax.f32 %v134_v14, 0.0 }
  0xe6   :  { %v136_v17 = vpop.f32.mrf.mxu0 }
  0xe7   :  { %v140_v19 = vpack.c.bf16 %v139_v16, %v139_v16 }
  0xe8   :  { %v333_v20 = vpop.f32.mrf.mxu0 }
  0xe9   :  { %339 = vmatmul.mubr.msk.bf16.vlgmr.msra.gmra.mxu1 %vm164_vm1, %v140_v19 }
  0xea   :  { %343 = vmatpush3.bf16.msra.mxu1 %v362_v18  ;;  %346 = vmatprep.mubr.msk.bf16.mxu1 %vm365_vm0, %v364_v0 }
  0xeb   :  { %344 = vmatprep.subr.bf16.mxu1 %v364_v0 }
  0xee   :  { %345 = vmatpush3.bf16.msra.mxu1 %v363_v21 }
 0x1a9   :  { %v202_v23 = vpop.f32.mrf.mxu1 }
 0x1aa   :  { %v203_v24 = vadd.f32 %v291_v22, %v202_v23 }
 0x1ab   :  { %v340_v25 = vpop.f32.mrf.mxu1 }
 0x1ac   :  { %v208_v26 = vmax.f32 %v203_v24, 0.0 }
 0x1ad   :  { %v205_v27 = vpop.f32.mrf.mxu1 }
 0x1ae   :  { %v209_v28 = vpack.c.bf16 %v208_v26, %v208_v26 }
 0x1af   :  { %v341_v29 = vpop.f32.mrf.mxu1 }
 0x1b0   :  { %347 = vmatmul.mubr.msk.bf16.vlgmr.msra.gmra.mxu1 %vm164_vm1, %v209_v28 }
 0x270   :  { %v270_v31 = vpop.f32.mrf.mxu1 }
 0x271   :  { %v271_v32 = vadd.f32 %v295_v30, %v270_v31 }
 0x272   :  { %v348_v33 = vpop.f32.mrf.mxu1 }
 0x273   :  { %277 = vst.msk [vmem:[%s469_s7] sm:$0xff] %vm276_vm2, %v271_v32 }
 0x274   :  { %v273_v34 = vpop.f32.mrf.mxu1 }
 0x276   :  { %v349_v35 = vpop.f32.mrf.mxu1 }

</bundles_post_ra>
